<compile_context>
chip_gen: v7x
topology: tpu7x:2x2x1
jax: 0.10.0
libtpu: 0.0.40
codegen_flags: <defaults>
</compile_context>

<pallas_src>
import jax
import jax.numpy as jnp
from jax.experimental import pallas as pl
from jax.experimental.pallas import tpu as pltpu


def _round_up(a: int, b: int) -> int:
    return ((a + b - 1) // b) * b


def _tpu_defaults():
    """Generation-aware row tile / VMEM budgets."""
    try:
        info = pltpu.get_tpu_info()
        vmem = getattr(info, "vmem_capacity_bytes", 128 * 1024 * 1024)
    except Exception:
        vmem = 128 * 1024 * 1024
    if vmem <= 64 * 1024 * 1024:
        # v7x-class: 64 MiB VMEM per TC, 2 TCs -> smaller tiles, tighter budgets.
        return dict(tm=256, vmem_limit=56 * 1024 * 1024, w_budget=20 * 1024 * 1024)
    # v5e / v6e: 128 MiB physical VMEM.
    return dict(tm=512, vmem_limit=48 * 1024 * 1024, w_budget=28 * 1024 * 1024)


def _choose_tm(M: int, target: int) -> int:
    """Row-tile size: big, multiple of 8, and (when possible) a divisor of the
    8-rounded row count so ragged M doesn't pay up-to-(tm-1) rows of pad waste."""
    mp8 = _round_up(max(M, 1), 8)
    if mp8 <= target:
        return mp8
    for cand in range(target, 63, -8):
        if mp8 % cand == 0:
            return cand          # zero row-padding waste
    return target                # fall back: pad rows up to a tile multiple


def _choose_tk(Dp: int, w_itemsize: int, budget_bytes: int) -> int:
    """Contraction-tile size for the fused (Dp, 2*Dp) weight block."""
    # Full-K weight block resident (single-buffered) if it fits the budget.
    if Dp * 2 * Dp * w_itemsize <= budget_bytes:
        return Dp
    # Otherwise stream double-buffered (tk, 2*Dp) K-slices.
    n = Dp // 128
    for d in range(n, 0, -1):
        if n % d == 0 and 2 * (d * 128) * 2 * Dp * w_itemsize <= budget_bytes:
            return d * 128
    return 128


def highway_kernel(x_ref, w_ref, b_ref, o_ref, acc_ref):
    """x_ref: (tm, Dp) row tile (resident across k); w_ref: (tk, 2*Dp) K-slice of
    [W_proj^T | W_gate^T]; b_ref: (1, 2*Dp) fused f32 bias; o_ref: (tm, Dp);
    acc_ref: (tm, 2*Dp) f32 accumulator scratch."""
    k = pl.program_id(1)
    nk = pl.num_programs(1)
    dp = o_ref.shape[-1]
    tk = w_ref.shape[0]

    @pl.when(k == 0)
    def _():
        acc_ref[...] = jnp.zeros_like(acc_ref)

    # One fused MXU matmul per K-slice produces both pre-activations; f32 accumulate.
    off = pl.multiple_of(k * tk, 128)
    xk = x_ref[:, pl.ds(off, tk)]
    acc_ref[...] += jnp.dot(xk, w_ref[...], preferred_element_type=jnp.float32)

    @pl.when(k == nk - 1)
    def _():
        h = acc_ref[...] + b_ref[...].astype(jnp.float32)
        proj = jnp.maximum(h[:, :dp], 0.0)          # ReLU(x @ Wp^T + bp)   (VPU)
        gate = jax.nn.sigmoid(h[:, dp:])            # sigmoid(x @ Wg^T + bg) (EUP)
        xf = x_ref[...].astype(jnp.float32)
        out = gate * (proj - xf) + xf               # == proj*gate + (1-gate)*x
        o_ref[...] = out.astype(o_ref.dtype)


def prepare_highway_params(w_proj, b_proj, w_gate, b_gate, *, mxu_dtype=jnp.bfloat16):
    """One-time parameter prep (cache the result; do NOT run per forward pass).

    PyTorch nn.Linear computes x @ W.T + b, so weights are pre-transposed, padded to
    a lane-dense width (multiple of 128) and concatenated into one (Dp, 2*Dp) RHS.
    `mxu_dtype` (default bf16) is the matmul-operand dtype; None keeps the weight dtype.
    """
    D = w_proj.shape[0]
    Dp = _round_up(D, 128)
    wd = mxu_dtype if mxu_dtype is not None else w_proj.dtype

    def _prep(w):
        return jnp.pad(w.T.astype(wd), ((0, Dp - D), (0, Dp - D)))

    w_cat = jnp.concatenate([_prep(w_proj), _prep(w_gate)], axis=1)       # (Dp, 2*Dp)
    b_cat = jnp.concatenate(
        [jnp.pad(b_proj, (0, Dp - D)), jnp.pad(b_gate, (0, Dp - D))]
    ).astype(jnp.float32).reshape(1, 2 * Dp)
    return w_cat, b_cat


def highway_apply(x, w_cat, b_cat, *, tm=None, max_weight_vmem_bytes=None,
                  vmem_limit_bytes=None):
    """Hot path: x [L, B, D], pre-fused weights from prepare_highway_params."""
    L, B, D = x.shape
    M = L * B
    Dp = w_cat.shape[0]
    assert w_cat.shape == (Dp, 2 * Dp) and b_cat.shape == (1, 2 * Dp)
    out_dtype = x.dtype

    defaults = _tpu_defaults()
    tm_target = tm if tm is not None else defaults["tm"]
    vmem_limit = vmem_limit_bytes if vmem_limit_bytes is not None else defaults["vmem_limit"]
    w_budget = max_weight_vmem_bytes if max_weight_vmem_bytes is not None else defaults["w_budget"]

    w_item = w_cat.dtype.itemsize
    x_item = w_item                                  # x is cast to the weight dtype
    out_item = jnp.dtype(out_dtype).itemsize

    tm_ = _choose_tm(M, tm_target)
    tk = _choose_tk(Dp, w_item, w_budget)
    nk = Dp // tk

    # Keep x/out/accumulator tiles + weight block comfortably inside the VMEM limit.
    def _vmem_bytes(rows):
        w_bufs = 1 if nk == 1 else 2
        return (2 * rows * Dp * x_item               # x row tile (double-buffered)
                + 2 * rows * Dp * out_item           # output tile (double-buffered)
                + rows * 2 * Dp * 4                  # f32 accumulator scratch
                + w_bufs * tk * 2 * Dp * w_item      # fused weights
                + 2 * 2 * Dp * 4)                    # fused bias
    while tm_ > 64 and _vmem_bytes(tm_) > vmem_limit - (4 << 20):
        tm_ = max(64, _round_up(tm_ // 2, 8))

    Mp = _round_up(M, tm_)

    x2d = x.reshape(M, D)
    if x2d.dtype != w_cat.dtype:
        x2d = x2d.astype(w_cat.dtype)                # bf16 into the MXU by default
    if Mp != M or Dp != D:
        x2d = jnp.pad(x2d, ((0, Mp - M), (0, Dp - D)))

    cost = pl.CostEstimate(
        flops=2 * Mp * Dp * (2 * Dp),
        transcendentals=Mp * Dp,
        bytes_accessed=(Mp * Dp * x_item + Dp * 2 * Dp * w_item
                        + 2 * Dp * 4 + Mp * Dp * out_item),
    )

    def _make_call(single_buffer_invariant):
        if single_buffer_invariant:
            # Grid-invariant blocks: no re-DMA, so single-buffer to halve weight VMEM.
            w_spec = pl.BlockSpec((tk, 2 * Dp), lambda i, k: (k, 0),
                                  pipeline_mode=pl.Buffered(1))
            b_spec = pl.BlockSpec((1, 2 * Dp), lambda i, k: (0, 0),
                                  pipeline_mode=pl.Buffered(1))
        else:
            w_spec = pl.BlockSpec((tk, 2 * Dp), lambda i, k: (k, 0))
            b_spec = pl.BlockSpec((1, 2 * Dp), lambda i, k: (0, 0))
        return pl.pallas_call(
            highway_kernel,
            out_shape=jax.ShapeDtypeStruct((Mp, Dp), out_dtype),
            grid_spec=pltpu.PrefetchScalarGridSpec(
                num_scalar_prefetch=0,
                grid=(Mp // tm_, nk),
                in_specs=[
                    pl.BlockSpec((tm_, Dp), lambda i, k: (i, 0)),   # x row tile
                    w_spec,                                         # fused weights
                    b_spec,                                         # fused bias
                ],
                out_specs=pl.BlockSpec((tm_, Dp), lambda i, k: (i, 0)),
                scratch_shapes=[pltpu.VMEM((tm_, 2 * Dp), jnp.float32)],
            ),
            compiler_params=pltpu.CompilerParams(
                # Row axis parallel (megacore-sharded on v7x); K axis is a reduction.
                dimension_semantics=("parallel", "arbitrary"),
                vmem_limit_bytes=vmem_limit,
            ),
            cost_estimate=cost,
        )

    if nk == 1:
        try:
            out2d = _make_call(True)(x2d, w_cat, b_cat)
        except Exception:
            # pipeline_mode single-buffering unavailable -> default double-buffering.
            out2d = _make_call(False)(x2d, w_cat, b_cat)
    else:
        out2d = _make_call(False)(x2d, w_cat, b_cat)

    return out2d[:M, :D].reshape(L, B, D)


def highway_forward(x, w_proj, b_proj, w_gate, b_gate, *, mxu_dtype=jnp.bfloat16,
                    tm=None, max_weight_vmem_bytes=None):
    """Convenience wrapper. For repeated calls, run prepare_highway_params once and
    call highway_apply directly so weight prep stays out of the hot path."""
    w_cat, b_cat = prepare_highway_params(w_proj, b_proj, w_gate, b_gate,
                                          mxu_dtype=mxu_dtype)
    return highway_apply(x, w_cat, b_cat, tm=tm,
                         max_weight_vmem_bytes=max_weight_vmem_bytes)


def highway_reference(x, w_proj, b_proj, w_gate, b_gate):
    proj = jax.nn.relu(jnp.einsum("lbd,ed->lbe", x, w_proj) + b_proj)
    gate = jax.nn.sigmoid(jnp.einsum("lbd,ed->lbe", x, w_gate) + b_gate)
    return proj * gate + (1.0 - gate) * x


if __name__ == "__main__":
    key = jax.random.PRNGKey(0)
    kx, kwp, kbp, kwg, kbg, kx2, kw = jax.random.split(key, 7)

    # --- Config 1: module-default shapes, bf16 MXU operands, cached fused weights.
    L, B, D = 8, 2, 32   # sentence_length, batch_size, embed_dim
    x = jax.random.normal(kx, (L, B, D), dtype=jnp.float32)
    w_proj = jax.random.normal(kwp, (D, D), dtype=jnp.float32) * 0.1
    b_proj = jax.random.normal(kbp, (D,), dtype=jnp.float32) * 0.1
    w_gate = jax.random.normal(kwg, (D, D), dtype=jnp.float32) * 0.1
    b_gate = jax.random.normal(kbg, (D,), dtype=jnp.float32) * 0.1
    ref = highway_reference(x, w_proj, b_proj, w_gate, b_gate)

    w_cat, b_cat = prepare_highway_params(w_proj, b_proj, w_gate, b_gate)  # one-time
    out = jax.block_until_ready(highway_apply(x, w_cat, b_cat))
    assert out.shape == (L, B, D) and out.dtype == x.dtype
    # bf16 MXU operands: relaxed tolerance (signed-off accuracy budget).
    assert jnp.allclose(out, ref, atol=5e-2, rtol=5e-2), "bf16-MXU path mismatch"

    # --- Config 2: exact f32 MXU operands.
    out_f32 = jax.block_until_ready(
        highway_forward(x, w_proj, b_proj, w_gate, b_gate, mxu_dtype=None))
    assert jnp.allclose(out_f32, ref, atol=1e-5, rtol=1e-5), "f32 path mismatch"

    # --- Config 3: ragged rows, D not a multiple of 128, forced K-tiling, bf16 I/O.
    L2, B2, D2 = 5, 3, 160           # M=15 (padded to 16), Dp=256, nk=2
    x2 = jax.random.normal(kx2, (L2, B2, D2), dtype=jnp.bfloat16)
    kw1, kw2, kb1, kb2 = jax.random.split(kw, 4)
    wp2 = jax.random.normal(kw1, (D2, D2), dtype=jnp.float32) * 0.1
    wg2 = jax.random.normal(kw2, (D2, D2), dtype=jnp.float32) * 0.1
    bp2 = jax.random.normal(kb1, (D2,), dtype=jnp.float32) * 0.1
    bg2 = jax.random.normal(kb2, (D2,), dtype=jnp.float32) * 0.1
    ref2 = highway_reference(x2.astype(jnp.float32), wp2, bp2, wg2, bg2)
    out2 = jax.block_until_ready(
        highway_forward(x2, wp2, bp2, wg2, bg2,
                        max_weight_vmem_bytes=128 * 1024))   # force K-tiling (nk=2)
    assert out2.shape == (L2, B2, D2) and out2.dtype == x2.dtype
    assert jnp.allclose(out2.astype(jnp.float32), ref2, atol=1e-1, rtol=1e-1), \
        "K-tiled / ragged-M / bf16 path mismatch"

    print("KERNEL_OK")
</pallas_src>

<mosaic_0001>
module attributes {stable_mosaic.version = 11 : i64} {
  func.func @highway_kernel(%arg0: i32, %arg1: i32, %arg2: memref<16x128xbf16, #tpu.memory_space<vmem>>, %arg3: memref<128x256xbf16, #tpu.memory_space<vmem>>, %arg4: memref<1x256xf32, #tpu.memory_space<vmem>>, %arg5: memref<16x128xf32, #tpu.memory_space<vmem>>, %arg6: memref<16x256xf32, #tpu.memory_space<vmem>>) attributes {dimension_semantics = [#tpu.dimension_semantics<parallel>, #tpu.dimension_semantics<arbitrary>], iteration_bounds = array<i64: 1, 1>, scalar_prefetch = 0 : i64, scratch_operands = 1 : i64, tpu.core_type = #tpu.core_type<tc>, window_params = [{transform_indices = @transform_0, window_bounds = array<i64: 16, 128>}, {pipeline_mode = #tpu.pipeline_mode<synchronous>, transform_indices = @transform_1, window_bounds = array<i64: 128, 256>}, {pipeline_mode = #tpu.pipeline_mode<synchronous>, transform_indices = @transform_2, window_bounds = array<i64: 1, 256>}, {transform_indices = @transform_3, window_bounds = array<i64: 16, 128>}]} {
    %c0_i32 = arith.constant 0 : i32
    %0 = arith.cmpi eq, %arg1, %c0_i32 : i32
    %1 = arith.extui %0 : i1 to i32
    %c0_i32_0 = arith.constant 0 : i32
    %2 = arith.cmpi ne, %1, %c0_i32_0 : i32
    scf.if %2 {
      %cst_9 = arith.constant 0.000000e+00 : f32
      %15 = vector.broadcast %cst_9 : f32 to vector<16x256xf32>
      %c0_10 = arith.constant 0 : index
      %c0_11 = arith.constant 0 : index
      %16 = vector.load %arg6[%c0_10, %c0_11] : memref<16x256xf32, #tpu.memory_space<vmem>>, vector<16x256xf32>
      tpu.vector_store %arg6[%c0_10, %c0_11], %15 {strides = array<i32>} : memref<16x256xf32, #tpu.memory_space<vmem>>, vector<16x256xf32>,
    } else {
    }
    %c128_i32 = arith.constant 128 : i32
    %3 = arith.muli %arg1, %c128_i32 : i32
    %4 = tpu.assume_multiple %3, 128 : i32
    %c0 = arith.constant 0 : index
    %5 = arith.index_cast %4 : i32 to index
    %6 = vector.load %arg2[%c0, %5] : memref<16x128xbf16, #tpu.memory_space<vmem>>, vector<16x128xbf16>
    %c0_1 = arith.constant 0 : index
    %c0_2 = arith.constant 0 : index
    %7 = vector.load %arg6[%c0_1, %c0_2] : memref<16x256xf32, #tpu.memory_space<vmem>>, vector<16x256xf32>
    %c0_3 = arith.constant 0 : index
    %c0_4 = arith.constant 0 : index
    %8 = vector.load %arg3[%c0_3, %c0_4] : memref<128x256xbf16, #tpu.memory_space<vmem>>, vector<128x256xbf16>
    %cst = arith.constant dense<0.000000e+00> : vector<16x256xf32>
    %9 = tpu.matmul %6, %8, %cst {dimension_numbers = #tpu.dot_dimension_numbers<[1], [0], [0], [1], [0, 0, 1, 1], [], []>} : vector<16x128xbf16>, vector<128x256xbf16>, vector<16x256xf32> -> vector<16x256xf32>
    %10 = arith.addf %7, %9 : vector<16x256xf32>
    %c0_5 = arith.constant 0 : index
    %c0_6 = arith.constant 0 : index
    %11 = vector.load %arg6[%c0_5, %c0_6] : memref<16x256xf32, #tpu.memory_space<vmem>>, vector<16x256xf32>
    tpu.vector_store %arg6[%c0_5, %c0_6], %10 {strides = array<i32>} : memref<16x256xf32, #tpu.memory_space<vmem>>, vector<16x256xf32>,
    %c0_i32_7 = arith.constant 0 : i32
    %12 = arith.cmpi eq, %arg1, %c0_i32_7 : i32
    %13 = arith.extui %12 : i1 to i32
    %c0_i32_8 = arith.constant 0 : i32
    %14 = arith.cmpi ne, %13, %c0_i32_8 : i32
    scf.if %14 {
      %c0_9 = arith.constant 0 : index
      %c0_10 = arith.constant 0 : index
      %15 = vector.load %arg6[%c0_9, %c0_10] : memref<16x256xf32, #tpu.memory_space<vmem>>, vector<16x256xf32>
      %c0_11 = arith.constant 0 : index
      %c0_12 = arith.constant 0 : index
      %16 = vector.load %arg4[%c0_11, %c0_12] : memref<1x256xf32, #tpu.memory_space<vmem>>, vector<1x256xf32>
      %17 = vector.broadcast %16 : vector<1x256xf32> to vector<16x256xf32>
      %18 = arith.addf %15, %17 : vector<16x256xf32>
      %19 = vector.extract_strided_slice %18 {offsets = [0, 0], sizes = [16, 128], strides = [1, 1]} : vector<16x256xf32> to vector<16x128xf32>
      %cst_13 = arith.constant 0.000000e+00 : f32
      %20 = vector.broadcast %cst_13 : f32 to vector<16x128xf32>
      %21 = arith.maximumf %19, %20 : vector<16x128xf32>
      %22 = vector.extract_strided_slice %18 {offsets = [0, 128], sizes = [16, 128], strides = [1, 1]} : vector<16x256xf32> to vector<16x128xf32>
      %23 = arith.negf %22 : vector<16x128xf32>
      %24 = math.exp %23 : vector<16x128xf32>
      %cst_14 = arith.constant 1.000000e+00 : f32
      %25 = vector.broadcast %cst_14 : f32 to vector<16x128xf32>
      %26 = arith.addf %25, %24 : vector<16x128xf32>
      %27 = arith.divf %25, %26 : vector<16x128xf32>
      %c0_15 = arith.constant 0 : index
      %c0_16 = arith.constant 0 : index
      %28 = vector.load %arg2[%c0_15, %c0_16] : memref<16x128xbf16, #tpu.memory_space<vmem>>, vector<16x128xbf16>
      %29 = arith.extf %28 : vector<16x128xbf16> to vector<16x128xf32>
      %30 = arith.subf %21, %29 : vector<16x128xf32>
      %31 = arith.mulf %27, %30 : vector<16x128xf32>
      %32 = arith.addf %31, %29 : vector<16x128xf32>
      %c0_17 = arith.constant 0 : index
      %c0_18 = arith.constant 0 : index
      %33 = vector.load %arg5[%c0_17, %c0_18] : memref<16x128xf32, #tpu.memory_space<vmem>>, vector<16x128xf32>
      tpu.vector_store %arg5[%c0_17, %c0_18], %32 {strides = array<i32>} : memref<16x128xf32, #tpu.memory_space<vmem>>, vector<16x128xf32>,
    } else {
    }
    return
  }
  func.func @transform_0(%arg0: i32, %arg1: i32) -> (i32, i32) {
    %c0_i32 = arith.constant 0 : i32
    %c0_i32_0 = arith.constant 0 : i32
    return %arg0, %c0_i32 : i32, i32
  }
  func.func @transform_1(%arg0: i32, %arg1: i32) -> (i32, i32) {
    %c0_i32 = arith.constant 0 : i32
    %c0_i32_0 = arith.constant 0 : i32
    return %arg1, %c0_i32 : i32, i32
  }
  func.func @transform_2(%arg0: i32, %arg1: i32) -> (i32, i32) {
    %c0_i32 = arith.constant 0 : i32
    %c0_i32_0 = arith.constant 0 : i32
    %c0_i32_1 = arith.constant 0 : i32
    return %c0_i32, %c0_i32_0 : i32, i32
  }
  func.func @transform_3(%arg0: i32, %arg1: i32) -> (i32, i32) {
    %c0_i32 = arith.constant 0 : i32
    %c0_i32_0 = arith.constant 0 : i32
    return %arg0, %c0_i32 : i32, i32
  }
}

module attributes {stable_mosaic.version = 11 : i64} {
  func.func @highway_kernel(%arg0: i32, %arg1: i32, %arg2: memref<16x128xbf16, #tpu.memory_space<vmem>>, %arg3: memref<128x256xbf16, #tpu.memory_space<vmem>>, %arg4: memref<1x256xf32, #tpu.memory_space<vmem>>, %arg5: memref<16x128xf32, #tpu.memory_space<vmem>>, %arg6: memref<16x256xf32, #tpu.memory_space<vmem>>) attributes {dimension_semantics = [#tpu.dimension_semantics<parallel>, #tpu.dimension_semantics<arbitrary>], iteration_bounds = array<i64: 1, 1>, scalar_prefetch = 0 : i64, scratch_operands = 1 : i64, tpu.core_type = #tpu.core_type<tc>, window_params = [{transform_indices = @transform_0, window_bounds = array<i64: 16, 128>}, {transform_indices = @transform_1, window_bounds = array<i64: 128, 256>}, {pipeline_mode = #tpu.pipeline_mode<synchronous>, transform_indices = @transform_2, window_bounds = array<i64: 1, 256>}, {transform_indices = @transform_3, window_bounds = array<i64: 16, 128>}]} {
    %c0_i32 = arith.constant 0 : i32
    %0 = arith.cmpi eq, %arg1, %c0_i32 : i32
    %1 = arith.extui %0 : i1 to i32
    %c0_i32_0 = arith.constant 0 : i32
    %2 = arith.cmpi ne, %1, %c0_i32_0 : i32
    scf.if %2 {
      %cst_9 = arith.constant 0.000000e+00 : f32
      %15 = vector.broadcast %cst_9 : f32 to vector<16x256xf32>
      %c0_10 = arith.constant 0 : index
      %c0_11 = arith.constant 0 : index
      %16 = vector.load %arg6[%c0_10, %c0_11] : memref<16x256xf32, #tpu.memory_space<vmem>>, vector<16x256xf32>
      tpu.vector_store %arg6[%c0_10, %c0_11], %15 {strides = array<i32>} : memref<16x256xf32, #tpu.memory_space<vmem>>, vector<16x256xf32>,
    } else {
    }
    %c128_i32 = arith.constant 128 : i32
    %3 = arith.muli %arg1, %c128_i32 : i32
    %4 = tpu.assume_multiple %3, 128 : i32
    %c0 = arith.constant 0 : index
    %5 = arith.index_cast %4 : i32 to index
    %6 = vector.load %arg2[%c0, %5] : memref<16x128xbf16, #tpu.memory_space<vmem>>, vector<16x128xbf16>
    %c0_1 = arith.constant 0 : index
    %c0_2 = arith.constant 0 : index
    %7 = vector.load %arg6[%c0_1, %c0_2] : memref<16x256xf32, #tpu.memory_space<vmem>>, vector<16x256xf32>
    %c0_3 = arith.constant 0 : index
    %c0_4 = arith.constant 0 : index
    %8 = vector.load %arg3[%c0_3, %c0_4] : memref<128x256xbf16, #tpu.memory_space<vmem>>, vector<128x256xbf16>
    %cst = arith.constant dense<0.000000e+00> : vector<16x256xf32>
    %9 = tpu.matmul %6, %8, %cst {dimension_numbers = #tpu.dot_dimension_numbers<[1], [0], [0], [1], [0, 0, 1, 1], [], []>} : vector<16x128xbf16>, vector<128x256xbf16>, vector<16x256xf32> -> vector<16x256xf32>
    %10 = arith.addf %7, %9 : vector<16x256xf32>
    %c0_5 = arith.constant 0 : index
    %c0_6 = arith.constant 0 : index
    %11 = vector.load %arg6[%c0_5, %c0_6] : memref<16x256xf32, #tpu.memory_space<vmem>>, vector<16x256xf32>
    tpu.vector_store %arg6[%c0_5, %c0_6], %10 {strides = array<i32>} : memref<16x256xf32, #tpu.memory_space<vmem>>, vector<16x256xf32>,
    %c0_i32_7 = arith.constant 0 : i32
    %12 = arith.cmpi eq, %arg1, %c0_i32_7 : i32
    %13 = arith.extui %12 : i1 to i32
    %c0_i32_8 = arith.constant 0 : i32
    %14 = arith.cmpi ne, %13, %c0_i32_8 : i32
    scf.if %14 {
      %c0_9 = arith.constant 0 : index
      %c0_10 = arith.constant 0 : index
      %15 = vector.load %arg6[%c0_9, %c0_10] : memref<16x256xf32, #tpu.memory_space<vmem>>, vector<16x256xf32>
      %c0_11 = arith.constant 0 : index
      %c0_12 = arith.constant 0 : index
      %16 = vector.load %arg4[%c0_11, %c0_12] : memref<1x256xf32, #tpu.memory_space<vmem>>, vector<1x256xf32>
      %17 = vector.broadcast %16 : vector<1x256xf32> to vector<16x256xf32>
      %18 = arith.addf %15, %17 : vector<16x256xf32>
      %19 = vector.extract_strided_slice %18 {offsets = [0, 0], sizes = [16, 128], strides = [1, 1]} : vector<16x256xf32> to vector<16x128xf32>
      %cst_13 = arith.constant 0.000000e+00 : f32
      %20 = vector.broadcast %cst_13 : f32 to vector<16x128xf32>
      %21 = arith.maximumf %19, %20 : vector<16x128xf32>
      %22 = vector.extract_strided_slice %18 {offsets = [0, 128], sizes = [16, 128], strides = [1, 1]} : vector<16x256xf32> to vector<16x128xf32>
      %23 = arith.negf %22 : vector<16x128xf32>
      %24 = math.exp %23 : vector<16x128xf32>
      %cst_14 = arith.constant 1.000000e+00 : f32
      %25 = vector.broadcast %cst_14 : f32 to vector<16x128xf32>
      %26 = arith.addf %25, %24 : vector<16x128xf32>
      %27 = arith.divf %25, %26 : vector<16x128xf32>
      %c0_15 = arith.constant 0 : index
      %c0_16 = arith.constant 0 : index
      %28 = vector.load %arg2[%c0_15, %c0_16] : memref<16x128xbf16, #tpu.memory_space<vmem>>, vector<16x128xbf16>
      %29 = arith.extf %28 : vector<16x128xbf16> to vector<16x128xf32>
      %30 = arith.subf %21, %29 : vector<16x128xf32>
      %31 = arith.mulf %27, %30 : vector<16x128xf32>
      %32 = arith.addf %31, %29 : vector<16x128xf32>
      %c0_17 = arith.constant 0 : index
      %c0_18 = arith.constant 0 : index
      %33 = vector.load %arg5[%c0_17, %c0_18] : memref<16x128xf32, #tpu.memory_space<vmem>>, vector<16x128xf32>
      tpu.vector_store %arg5[%c0_17, %c0_18], %32 {strides = array<i32>} : memref<16x128xf32, #tpu.memory_space<vmem>>, vector<16x128xf32>,
    } else {
    }
    return
  }
  func.func @transform_0(%arg0: i32, %arg1: i32) -> (i32, i32) {
    %c0_i32 = arith.constant 0 : i32
    %c0_i32_0 = arith.constant 0 : i32
    return %arg0, %c0_i32 : i32, i32
  }
  func.func @transform_1(%arg0: i32, %arg1: i32) -> (i32, i32) {
    %c0_i32 = arith.constant 0 : i32
    %c0_i32_0 = arith.constant 0 : i32
    return %arg1, %c0_i32 : i32, i32
  }
  func.func @transform_2(%arg0: i32, %arg1: i32) -> (i32, i32) {
    %c0_i32 = arith.constant 0 : i32
    %c0_i32_0 = arith.constant 0 : i32
    %c0_i32_1 = arith.constant 0 : i32
    return %c0_i32, %c0_i32_0 : i32, i32
  }
  func.func @transform_3(%arg0: i32, %arg1: i32) -> (i32, i32) {
    %c0_i32 = arith.constant 0 : i32
    %c0_i32_0 = arith.constant 0 : i32
    return %arg0, %c0_i32 : i32, i32
  }
}

</mosaic_0001>

<bundles_post_ra>
// kernel: tpu_custom_call.1
= control target key start
LH: loop header
LB: loop body
LE: loop exit
PB: predicated region body
PF: predicated region fallthrough
CT: control target
= control target key end

     0   :  { %8 = vsyncpa [#allocation4], 0  ;;  %s494_s0 = inlined_call_operand.hbm [shape: bf16[16,128], index: 0, kind: input, shape index: {}]   ;;  %s495_s1 = inlined_call_operand.hbm [shape: bf16[128,256], index: 1, kind: input, shape index: {}]   ;;  %s496_s2 = inlined_call_operand.vmem [shape: f32[1,256], index: 2, kind: input, shape index: {}]   ;;  %s497_s3 = inlined_call_operand.hbm [shape: f32[16,128], index: 3, kind: output, shape index: {}]  }
   0x1   :  { %9 = vsyncpa [#allocation7], 0 }
   0x2   :  { %10 = vsyncpa [#allocation5], 0  ;;  %s421_s12 = smov [#allocation3]   ;;  %s349_s16 = scalar_lea.hbm %s494_s0, 128 }
   0x3   :  { %s16_s13 = sshll.u32 %s421_s12, 4  ;;  %p350_p0 = scmp.ne.s32.totalorder %s494_s0, %s349_s16  ;;  %s17_s13 = int_to_ptr.vmem [resolvable:$true] %s16_s13 }
   0x4   :  { %p353_p1 = scmp.lt.u32.totalorder %s349_s16, %s494_s0 }
   0x6   :  { %p355_p2 = pnand %p353_p1, %p350_p0 }
   0x8   :  { %358 = shalt.err (!%p355_p2)
}
   0x9   :  { %s359_s21 = scalar_lea.vmem %s17_s13, 128  ;;  %p364_p4 = scmp.lt.s32.totalorder %s17_s13, %s17_s13 }
   0xa   :  { %p360_p3 = scmp.ne.s32.totalorder %s17_s13, %s359_s21  ;;  %p365_p5 = scmp.lt.s32.totalorder %s359_s21, %s359_s21 }
   0xc   :  { %p366_p6 = por %p365_p5, %p364_p4 }
   0xe   :  { %p367_p7 = pnand %p366_p6, %p360_p3 }
  0x10   :  { %370 = shalt.err (!%p367_p7)
}
  0x11   :  { %s422_s22 = smov 64   ;;  %s423_s23 = smov 4  }
  0x12   :  { %22 = dma.hbm_to_vmem [thread:$0]  %s494_s0, 128, %s17_s13, [#allocation4], %s422_s22, %s422_s22, %s423_s23  }
  0x13   :  { %s424_s26 = smov [#allocation6]   ;;  %s371_s30 = scalar_lea.hbm %s495_s1, 2048 }
  0x14   :  { %s28_s27 = sshll.u32 %s424_s26, 4  ;;  %p372_p8 = scmp.ne.s32.totalorder %s495_s1, %s371_s30  ;;  %s29_s27 = int_to_ptr.vmem [resolvable:$true] %s28_s27 }
  0x15   :  { %p375_p9 = scmp.lt.u32.totalorder %s371_s30, %s495_s1 }
  0x17   :  { %p377_p10 = pnand %p375_p9, %p372_p8 }
  0x19   :  { %380 = shalt.err (!%p377_p10)
}
  0x1a   :  { %s381_s8 = scalar_lea.vmem %s29_s27, 2048  ;;  %p386_p12 = scmp.lt.s32.totalorder %s29_s27, %s29_s27 }
  0x1b   :  { %p382_p11 = scmp.ne.s32.totalorder %s29_s27, %s381_s8  ;;  %p387_p13 = scmp.lt.s32.totalorder %s381_s8, %s381_s8 }
  0x1d   :  { %p388_p0 = por %p387_p13, %p386_p12 }
  0x1f   :  { %p389_p1 = pnand %p388_p0, %p382_p11 }
  0x21   :  { %392 = shalt.err (!%p389_p1)
}
  0x22   :  { %s425_s0 = smov 128   ;;  %s426_s9 = smov 8  }
  0x23   :  { %34 = dma.hbm_to_vmem [thread:$0]  %s495_s1, 2048, %s29_s27, [#allocation7], %s425_s0, %s425_s0, %s426_s9  }
  0x24   :  { %415 = dma.done.wait [#allocation4], 128  }
  0x25   :  { %416 = vsyncadd [#allocation4], 4294967168 }
  0x26   :  { %417 = dma.done.wait [#allocation7], 2048  }
  0x27   :  { %418 = vsyncadd [#allocation7], 4294965248  ;;  %v427_v0 = vmov 0   ;;  %v316_v1 = vld [vmem:[#allocation6 + $0x4] ss:$8 sps:$4 sm:$0xff]   ;;  %v340_v17 = vld [vmem:[#allocation3] sm:$0xff]   ;;  %v225_v18 = vlaneseq }
  0x28   :  { %197 = vmatprep.mubr.bf16.mxu0 %v427_v0  ;;  %v318_v2 = vld [vmem:[#allocation6] ss:$8 sps:$4 sm:$0xff]   ;;  %165 = vmatprep.subr.bf16.mxu0 %v316_v1  ;;  %v319_v3 = vld [vmem:[#allocation6 + $0x14] ss:$8 sps:$4 sm:$0xff]   ;;  %v321_v4 = vld [vmem:[#allocation6 + $0x10] ss:$8 sps:$4 sm:$0xff]  }
  0x29   :  { %166 = vmatpush1.bf16.msra.mxu0 %v318_v2  ;;  %v322_v5 = vld [vmem:[#allocation6 + $0x24] ss:$8 sps:$4 sm:$0xff]   ;;  %v324_v6 = vld [vmem:[#allocation6 + $0x20] ss:$8 sps:$4 sm:$0xff]   ;;  %v325_v7 = vld [vmem:[#allocation6 + $0x34] ss:$8 sps:$4 sm:$0xff]  }
  0x2a   :  { %167 = vmatprep.subr.bf16.mxu0 %v319_v3  ;;  %v327_v8 = vld [vmem:[#allocation6 + $0x30] ss:$8 sps:$4 sm:$0xff]   ;;  %v328_v9 = vld [vmem:[#allocation6 + $0x44] ss:$8 sps:$4 sm:$0xff]   ;;  %v330_v10 = vld [vmem:[#allocation6 + $0x40] ss:$8 sps:$4 sm:$0xff]  }
  0x2b   :  { %v331_v11 = vld [vmem:[#allocation6 + $0x54] ss:$8 sps:$4 sm:$0xff]   ;;  %v333_v12 = vld [vmem:[#allocation6 + $0x50] ss:$8 sps:$4 sm:$0xff]   ;;  %v334_v13 = vld [vmem:[#allocation6 + $0x64] ss:$8 sps:$4 sm:$0xff]  }
  0x2c   :  { %v336_v14 = vld [vmem:[#allocation6 + $0x60] ss:$8 sps:$4 sm:$0xff]   ;;  %v337_v15 = vld [vmem:[#allocation6 + $0x74] ss:$8 sps:$4 sm:$0xff]   ;;  %v339_v16 = vld [vmem:[#allocation6 + $0x70] ss:$8 sps:$4 sm:$0xff]  }
  0x2d   :  { %168 = vmatpush1.bf16.msra.mxu0 %v321_v4  ;;  %v226_v19 = vshrl.u32 %v225_v18, 7  ;;  %v223_v21 = vld [vmem:[%s496_s2] sm:$0x3]  ;;  %s428_s2 = smov [#allocation8]  }
  0x2e   :  { %169 = vmatprep.subr.bf16.mxu0 %v322_v5  ;;  %v305_v38 = vld [vmem:[#allocation3] sm:$0xff]   ;;  %s270_s13 = sshll.u32 %s428_s2, 4  ;;  %s271_s13 = int_to_ptr.vmem [resolvable:$true] %s270_s13 }
  0x2f   :  { %v231_v20 = vsub.s32 1, %v226_v19  ;;  %v227_v31 = vsub.s32 0, %v226_v19  ;;  %v306_v41 = vunpack.c.l.bf16 %v305_v38  ;;  %v307_v43 = vunpack.c.h.bf16 %v305_v38  ;;  %s393_s14 = scalar_lea.vmem %s271_s13, 256  ;;  %p398_p3 = scmp.lt.s32.totalorder %s271_s13, %s271_s13 }
  0x30   :  { %p394_p2 = scmp.ne.s32.totalorder %s271_s13, %s393_s14  ;;  %p399_p4 = scmp.lt.s32.totalorder %s393_s14, %s393_s14 }
  0x31   :  { %170 = vmatpush1.bf16.msra.mxu0 %v324_v6  ;;  %v232_v22 = vrot.slane %v223_v21, %v231_v20  ;;  %v228_v33 = vrot.slane %v223_v21, %v227_v31 }
  0x32   :  { %171 = vmatprep.subr.bf16.mxu0 %v325_v7  ;;  %p400_p5 = por %p399_p4, %p398_p3 }
  0x34   :  { %p401_p6 = pnand %p400_p5, %p394_p2 }
  0x35   :  { %172 = vmatpush1.bf16.msra.mxu0 %v327_v8 }
  0x36   :  { %173 = vmatprep.subr.bf16.mxu0 %v328_v9 }
  0x39   :  { %174 = vmatpush1.bf16.msra.mxu0 %v330_v10 }
  0x3a   :  { %175 = vmatprep.subr.bf16.mxu0 %v331_v11 }
  0x3d   :  { %176 = vmatpush1.bf16.msra.mxu0 %v333_v12 }
  0x3e   :  { %177 = vmatprep.subr.bf16.mxu0 %v334_v13 }
  0x41   :  { %178 = vmatpush1.bf16.msra.mxu0 %v336_v14 }
  0x42   :  { %179 = vmatprep.subr.bf16.mxu0 %v337_v15 }
  0x45   :  { %180 = vmatpush1.bf16.msra.mxu0 %v339_v16 }
  0x48   :  { %198 = vmatmul.mubr.bf16.vlgmr.msra.gmra.mrb[0].mxu0 %v340_v17 }
 0x11b   :  { %v199_v23 = vpop.f32.mrb[0].mxu0 }
 0x11c   :  { %v201_v24 = vpop.f32.mrb[1].mxu0  ;;  %v235_v37 = vadd.f32 %v228_v33, %v199_v23 }
 0x11d   :  { %v236_v25 = vadd.f32 %v232_v22, %v201_v24  ;;  %v203_v26 = vpop.f32.mrb[2].mxu0 }
 0x11e   :  { %v205_v27 = vpop.f32.mrb[3].mxu0  ;;  %v237_v39 = vadd.f32 %v228_v33, %v203_v26  ;;  %v239_v40 = vmax.f32 %v235_v37, 0.0 }
 0x11f   :  { %v302_v28 = vmul.f32 -1.442695, %v236_v25  ;;  %v238_v29 = vadd.f32 %v232_v22, %v205_v27 }
 0x120   :  { %v240_v42 = vmax.f32 %v237_v39, 0.0  ;;  %v257_v44 = vsub.f32 %v239_v40, %v306_v41 }
 0x121   :  { %341 = vpow2.f32 %v302_v28  ;;  %v303_v30 = vmul.f32 -1.442695, %v238_v29 }
 0x122   :  { %v258_v46 = vsub.f32 %v240_v42, %v307_v43 }
 0x123   :  { %343 = vpow2.f32 %v303_v30 }
 0x12b   :  { %v342_v32 = vpop.eup %341 }
 0x12c   :  { %v247_v34 = vadd.f32 1.0, %v342_v32 }
 0x12d   :  { %v344_v35 = vpop.eup %343 }
 0x12e   :  { %345 = vrcp.f32 %v247_v34  ;;  %v248_v36 = vadd.f32 1.0, %v344_v35 }
 0x130   :  { %347 = vrcp.f32 %v248_v36 }
 0x138   :  { %v346_v45 = vpop.eup %345 }
 0x139   :  { %v259_v47 = vmul.f32 %v346_v45, %v257_v44 }
 0x13a   :  { %v348_v48 = vpop.eup %347 }
 0x13b   :  { %v260_v49 = vmul.f32 %v348_v48, %v258_v46  ;;  %v261_v50 = vadd.f32 %v306_v41, %v259_v47 }
 0x13d   :  { %v262_v51 = vadd.f32 %v307_v43, %v260_v49  ;;  %263 = vst [vmem:[#allocation8] sm:$0xff] %v261_v50 }
 0x13f   :  { %264 = vst [vmem:[#allocation8 + $0x8] sm:$0xff] %v262_v51 }
 0x140   :  { %404 = shalt.err (!%p401_p6)
}
 0x141   :  { %s405_s17 = scalar_lea.hbm %s497_s3, 256 }
 0x142   :  { %p406_p7 = scmp.ne.s32.totalorder %s497_s3, %s405_s17  ;;  %p409_p8 = scmp.lt.u32.totalorder %s405_s17, %s497_s3 }
 0x144   :  { %p411_p9 = pnand %p409_p8, %p406_p7 }
 0x146   :  { %414 = shalt.err (!%p411_p9)
}
 0x147   :  { %276 = dma.vmem_to_hbm [thread:$0]  %s271_s13, 256, %s497_s3, [#allocation5], %s425_s0, %s425_s0, %s426_s9  }
 0x148   :  { %419 = dma.done.wait [#allocation5], 256  }
 0x149   :  { %420 = vsyncadd [#allocation5], 4294967040 }
 0x14a   :  { %280 = vsyncpa [#allocation4], 1 }
 0x14b   :  { %281 = vsyncpa [#allocation7], 1 }
 0x14c   :  { %282 = vsyncpa [#allocation5], 1 }

// kernel: tpu_custom_call.1
= control target key start
LH: loop header
LB: loop body
LE: loop exit
PB: predicated region body
PF: predicated region fallthrough
CT: control target
= control target key end

     0   :  { %8 = vsyncpa [#allocation4], 0  ;;  %s494_s0 = inlined_call_operand.hbm [shape: bf16[16,128], index: 0, kind: input, shape index: {}]   ;;  %s495_s1 = inlined_call_operand.hbm [shape: bf16[128,256], index: 1, kind: input, shape index: {}]   ;;  %s496_s2 = inlined_call_operand.vmem [shape: f32[1,256], index: 2, kind: input, shape index: {}]   ;;  %s497_s3 = inlined_call_operand.hbm [shape: f32[16,128], index: 3, kind: output, shape index: {}]  }
   0x1   :  { %9 = vsyncpa [#allocation7], 0 }
   0x2   :  { %10 = vsyncpa [#allocation5], 0  ;;  %s421_s12 = smov [#allocation3]   ;;  %s349_s16 = scalar_lea.hbm %s494_s0, 128 }
   0x3   :  { %s16_s13 = sshll.u32 %s421_s12, 4  ;;  %p350_p0 = scmp.ne.s32.totalorder %s494_s0, %s349_s16  ;;  %s17_s13 = int_to_ptr.vmem [resolvable:$true] %s16_s13 }
   0x4   :  { %p353_p1 = scmp.lt.u32.totalorder %s349_s16, %s494_s0 }
   0x6   :  { %p355_p2 = pnand %p353_p1, %p350_p0 }
   0x8   :  { %358 = shalt.err (!%p355_p2)
}
   0x9   :  { %s359_s21 = scalar_lea.vmem %s17_s13, 128  ;;  %p364_p4 = scmp.lt.s32.totalorder %s17_s13, %s17_s13 }
   0xa   :  { %p360_p3 = scmp.ne.s32.totalorder %s17_s13, %s359_s21  ;;  %p365_p5 = scmp.lt.s32.totalorder %s359_s21, %s359_s21 }
   0xc   :  { %p366_p6 = por %p365_p5, %p364_p4 }
   0xe   :  { %p367_p7 = pnand %p366_p6, %p360_p3 }
  0x10   :  { %370 = shalt.err (!%p367_p7)
}
  0x11   :  { %s422_s22 = smov 64   ;;  %s423_s23 = smov 4  }
  0x12   :  { %22 = dma.hbm_to_vmem [thread:$0]  %s494_s0, 128, %s17_s13, [#allocation4], %s422_s22, %s422_s22, %s423_s23  }
  0x13   :  { %s424_s26 = smov [#allocation6]   ;;  %s371_s30 = scalar_lea.hbm %s495_s1, 2048 }
  0x14   :  { %s28_s27 = sshll.u32 %s424_s26, 4  ;;  %p372_p8 = scmp.ne.s32.totalorder %s495_s1, %s371_s30  ;;  %s29_s27 = int_to_ptr.vmem [resolvable:$true] %s28_s27 }
  0x15   :  { %p375_p9 = scmp.lt.u32.totalorder %s371_s30, %s495_s1 }
  0x17   :  { %p377_p10 = pnand %p375_p9, %p372_p8 }
  0x19   :  { %380 = shalt.err (!%p377_p10)
}
  0x1a   :  { %s381_s8 = scalar_lea.vmem %s29_s27, 2048  ;;  %p386_p12 = scmp.lt.s32.totalorder %s29_s27, %s29_s27 }
  0x1b   :  { %p382_p11 = scmp.ne.s32.totalorder %s29_s27, %s381_s8  ;;  %p387_p13 = scmp.lt.s32.totalorder %s381_s8, %s381_s8 }
  0x1d   :  { %p388_p0 = por %p387_p13, %p386_p12 }
  0x1f   :  { %p389_p1 = pnand %p388_p0, %p382_p11 }
  0x21   :  { %392 = shalt.err (!%p389_p1)
}
  0x22   :  { %s425_s0 = smov 128   ;;  %s426_s9 = smov 8  }
  0x23   :  { %34 = dma.hbm_to_vmem [thread:$0]  %s495_s1, 2048, %s29_s27, [#allocation7], %s425_s0, %s425_s0, %s426_s9  }
  0x24   :  { %415 = dma.done.wait [#allocation4], 128  }
  0x25   :  { %416 = vsyncadd [#allocation4], 4294967168 }
  0x26   :  { %417 = dma.done.wait [#allocation7], 2048  }
  0x27   :  { %418 = vsyncadd [#allocation7], 4294965248  ;;  %v427_v0 = vmov 0   ;;  %v316_v1 = vld [vmem:[#allocation6 + $0x4] ss:$8 sps:$4 sm:$0xff]   ;;  %v340_v17 = vld [vmem:[#allocation3] sm:$0xff]   ;;  %v225_v18 = vlaneseq }
  0x28   :  { %197 = vmatprep.mubr.bf16.mxu0 %v427_v0  ;;  %v318_v2 = vld [vmem:[#allocation6] ss:$8 sps:$4 sm:$0xff]   ;;  %165 = vmatprep.subr.bf16.mxu0 %v316_v1  ;;  %v319_v3 = vld [vmem:[#allocation6 + $0x14] ss:$8 sps:$4 sm:$0xff]   ;;  %v321_v4 = vld [vmem:[#allocation6 + $0x10] ss:$8 sps:$4 sm:$0xff]  }
  0x29   :  { %166 = vmatpush1.bf16.msra.mxu0 %v318_v2  ;;  %v322_v5 = vld [vmem:[#allocation6 + $0x24] ss:$8 sps:$4 sm:$0xff]   ;;  %v324_v6 = vld [vmem:[#allocation6 + $0x20] ss:$8 sps:$4 sm:$0xff]   ;;  %v325_v7 = vld [vmem:[#allocation6 + $0x34] ss:$8 sps:$4 sm:$0xff]  }
  0x2a   :  { %167 = vmatprep.subr.bf16.mxu0 %v319_v3  ;;  %v327_v8 = vld [vmem:[#allocation6 + $0x30] ss:$8 sps:$4 sm:$0xff]   ;;  %v328_v9 = vld [vmem:[#allocation6 + $0x44] ss:$8 sps:$4 sm:$0xff]   ;;  %v330_v10 = vld [vmem:[#allocation6 + $0x40] ss:$8 sps:$4 sm:$0xff]  }
  0x2b   :  { %v331_v11 = vld [vmem:[#allocation6 + $0x54] ss:$8 sps:$4 sm:$0xff]   ;;  %v333_v12 = vld [vmem:[#allocation6 + $0x50] ss:$8 sps:$4 sm:$0xff]   ;;  %v334_v13 = vld [vmem:[#allocation6 + $0x64] ss:$8 sps:$4 sm:$0xff]  }
  0x2c   :  { %v336_v14 = vld [vmem:[#allocation6 + $0x60] ss:$8 sps:$4 sm:$0xff]   ;;  %v337_v15 = vld [vmem:[#allocation6 + $0x74] ss:$8 sps:$4 sm:$0xff]   ;;  %v339_v16 = vld [vmem:[#allocation6 + $0x70] ss:$8 sps:$4 sm:$0xff]  }
  0x2d   :  { %168 = vmatpush1.bf16.msra.mxu0 %v321_v4  ;;  %v226_v19 = vshrl.u32 %v225_v18, 7  ;;  %v223_v21 = vld [vmem:[%s496_s2] sm:$0x3]  ;;  %s428_s2 = smov [#allocation8]  }
  0x2e   :  { %169 = vmatprep.subr.bf16.mxu0 %v322_v5  ;;  %v305_v38 = vld [vmem:[#allocation3] sm:$0xff]   ;;  %s270_s13 = sshll.u32 %s428_s2, 4  ;;  %s271_s13 = int_to_ptr.vmem [resolvable:$true] %s270_s13 }
  0x2f   :  { %v231_v20 = vsub.s32 1, %v226_v19  ;;  %v227_v31 = vsub.s32 0, %v226_v19  ;;  %v306_v41 = vunpack.c.l.bf16 %v305_v38  ;;  %v307_v43 = vunpack.c.h.bf16 %v305_v38  ;;  %s393_s14 = scalar_lea.vmem %s271_s13, 256  ;;  %p398_p3 = scmp.lt.s32.totalorder %s271_s13, %s271_s13 }
  0x30   :  { %p394_p2 = scmp.ne.s32.totalorder %s271_s13, %s393_s14  ;;  %p399_p4 = scmp.lt.s32.totalorder %s393_s14, %s393_s14 }
  0x31   :  { %170 = vmatpush1.bf16.msra.mxu0 %v324_v6  ;;  %v232_v22 = vrot.slane %v223_v21, %v231_v20  ;;  %v228_v33 = vrot.slane %v223_v21, %v227_v31 }
  0x32   :  { %171 = vmatprep.subr.bf16.mxu0 %v325_v7  ;;  %p400_p5 = por %p399_p4, %p398_p3 }
  0x34   :  { %p401_p6 = pnand %p400_p5, %p394_p2 }
  0x35   :  { %172 = vmatpush1.bf16.msra.mxu0 %v327_v8 }
  0x36   :  { %173 = vmatprep.subr.bf16.mxu0 %v328_v9 }
  0x39   :  { %174 = vmatpush1.bf16.msra.mxu0 %v330_v10 }
  0x3a   :  { %175 = vmatprep.subr.bf16.mxu0 %v331_v11 }
  0x3d   :  { %176 = vmatpush1.bf16.msra.mxu0 %v333_v12 }
  0x3e   :  { %177 = vmatprep.subr.bf16.mxu0 %v334_v13 }
  0x41   :  { %178 = vmatpush1.bf16.msra.mxu0 %v336_v14 }
  0x42   :  { %179 = vmatprep.subr.bf16.mxu0 %v337_v15 }
  0x45   :  { %180 = vmatpush1.bf16.msra.mxu0 %v339_v16 }
  0x48   :  { %198 = vmatmul.mubr.bf16.vlgmr.msra.gmra.mrb[0].mxu0 %v340_v17 }
 0x11b   :  { %v199_v23 = vpop.f32.mrb[0].mxu0 }
 0x11c   :  { %v201_v24 = vpop.f32.mrb[1].mxu0  ;;  %v235_v37 = vadd.f32 %v228_v33, %v199_v23 }
 0x11d   :  { %v236_v25 = vadd.f32 %v232_v22, %v201_v24  ;;  %v203_v26 = vpop.f32.mrb[2].mxu0 }
 0x11e   :  { %v205_v27 = vpop.f32.mrb[3].mxu0  ;;  %v237_v39 = vadd.f32 %v228_v33, %v203_v26  ;;  %v239_v40 = vmax.f32 %v235_v37, 0.0 }
 0x11f   :  { %v302_v28 = vmul.f32 -1.442695, %v236_v25  ;;  %v238_v29 = vadd.f32 %v232_v22, %v205_v27 }
 0x120   :  { %v240_v42 = vmax.f32 %v237_v39, 0.0  ;;  %v257_v44 = vsub.f32 %v239_v40, %v306_v41 }
 0x121   :  { %341 = vpow2.f32 %v302_v28  ;;  %v303_v30 = vmul.f32 -1.442695, %v238_v29 }
 0x122   :  { %v258_v46 = vsub.f32 %v240_v42, %v307_v43 }
 0x123   :  { %343 = vpow2.f32 %v303_v30 }
 0x12b   :  { %v342_v32 = vpop.eup %341 }
 0x12c   :  { %v247_v34 = vadd.f32 1.0, %v342_v32 }
 0x12d   :  { %v344_v35 = vpop.eup %343 }
 0x12e   :  { %345 = vrcp.f32 %v247_v34  ;;  %v248_v36 = vadd.f32 1.0, %v344_v35 }
 0x130   :  { %347 = vrcp.f32 %v248_v36 }
 0x138   :  { %v346_v45 = vpop.eup %345 }
 0x139   :  { %v259_v47 = vmul.f32 %v346_v45, %v257_v44 }
 0x13a   :  { %v348_v48 = vpop.eup %347 }
 0x13b   :  { %v260_v49 = vmul.f32 %v348_v48, %v258_v46  ;;  %v261_v50 = vadd.f32 %v306_v41, %v259_v47 }
 0x13d   :  { %v262_v51 = vadd.f32 %v307_v43, %v260_v49  ;;  %263 = vst [vmem:[#allocation8] sm:$0xff] %v261_v50 }
 0x13f   :  { %264 = vst [vmem:[#allocation8 + $0x8] sm:$0xff] %v262_v51 }
 0x140   :  { %404 = shalt.err (!%p401_p6)
}
 0x141   :  { %s405_s17 = scalar_lea.hbm %s497_s3, 256 }
 0x142   :  { %p406_p7 = scmp.ne.s32.totalorder %s497_s3, %s405_s17  ;;  %p409_p8 = scmp.lt.u32.totalorder %s405_s17, %s497_s3 }
 0x144   :  { %p411_p9 = pnand %p409_p8, %p406_p7 }
 0x146   :  { %414 = shalt.err (!%p411_p9)
}
 0x147   :  { %276 = dma.vmem_to_hbm [thread:$0]  %s271_s13, 256, %s497_s3, [#allocation5], %s425_s0, %s425_s0, %s426_s9  }
 0x148   :  { %419 = dma.done.wait [#allocation5], 256  }
 0x149   :  { %420 = vsyncadd [#allocation5], 4294967040 }
 0x14a   :  { %280 = vsyncpa [#allocation4], 1 }
 0x14b   :  { %281 = vsyncpa [#allocation7], 1 }
 0x14c   :  { %282 = vsyncpa [#allocation5], 1 }

</bundles_post_ra>
